<compile_context>
chip_gen: v7x
topology: tpu7x:2x2x1
jax: 0.10.0
libtpu: 0.0.40
codegen_flags: <defaults>
</compile_context>

<pallas_src>
import jax
import jax.numpy as jnp
from jax.experimental import pallas as pl
from jax.experimental.pallas import tpu as pltpu


# ----------------------------------------------------------------------------
# Pallas kernel: VMEM embedding gather + flatten + 3-layer MLP with 2 fused heads
# ----------------------------------------------------------------------------
def range_model_kernel(ids_ref,        # (B, SEQ) int32, SMEM
                       emb_ref,        # (VOCAB, E) f32, VMEM
                       w1_ref,         # (T*E, Hp) f32   joined Linear (padded)
                       b1_ref,         # (1, Hp)   f32
                       wlr1_ref,       # (Hp, 2Hp) f32   [left_1 | right_1] fused
                       blr1_ref,       # (1, 2Hp)  f32
                       w2_ref,         # (2Hp, OUTP) f32 block-diag heads (lane-padded)
                       b2_ref,         # (1, OUTP) f32
                       out_ref,        # (Bp, OUTP) f32
                       x_vmem):        # scratch: (Bp, T*E) f32 VMEM
    B, SEQ = ids_ref.shape
    T = SEQ - 2
    TE = x_vmem.shape[1]
    E = TE // T

    # ---- 1) fused embedding gather + [:, 1:-1] slice + flatten(start_dim=1) ----
    # Table is VMEM-resident: each token row is a scalar-indexed vreg load stored
    # straight into its flattened (t*E) lane offset. No DMAs, no semaphores.
    x_vmem[...] = jnp.zeros_like(x_vmem)            # pad rows stay exactly zero
    for b in range(B):
        for t in range(T):
            row = ids_ref[b, t + 1]                 # has_start_token -> index t+1
            x_vmem[pl.ds(b, 1), pl.ds(t * E, E)] = emb_ref[pl.ds(row, 1), :]

    # ---- 2) joined Linear(T*E -> H) + ReLU : single K = T*E matmul ----
    joined = jnp.maximum(
        jnp.dot(x_vmem[...], w1_ref[...], preferred_element_type=jnp.float32)
        + b1_ref[...], 0.0)                         # (Bp, Hp)

    # ---- 3) left/right first layers fused: one (Hp, 2Hp) matmul + ReLU ----
    z = jnp.maximum(
        jnp.dot(joined, wlr1_ref[...], preferred_element_type=jnp.float32)
        + blr1_ref[...], 0.0)                       # (Bp, 2Hp) = [left | right]

    # ---- 4) left/right output layers: block-diagonal, lane-padded matmul ----
    out_ref[...] = (jnp.dot(z, w2_ref[...], preferred_element_type=jnp.float32)
                    + b2_ref[...])                  # (Bp, OUTP): col0=left, col1=right


def range_model_forward(input_ids, emb_table, params):
    """input_ids: (B, SEQ) int32; emb_table: (VOCAB, E) f32; params pre-fused/padded."""
    B, SEQ = input_ids.shape
    T = SEQ - 2                                     # [:, 1:-1]
    E = emb_table.shape[1]
    BP = ((B + 7) // 8) * 8                         # sublane-dense batch
    OUTP = params["b2"].shape[1]

    vmem = pl.BlockSpec(memory_space=pltpu.MemorySpace.VMEM)
    smem = pl.BlockSpec(memory_space=pltpu.MemorySpace.SMEM)

    # Gridless single call: all operands are KBs at these shapes.  When B scales,
    # add a leading grid axis over B-tiles with dimension_semantics=("parallel",).
    y = pl.pallas_call(
        range_model_kernel,
        out_shape=jax.ShapeDtypeStruct((BP, OUTP), jnp.float32),
        in_specs=[smem, vmem, vmem, vmem, vmem, vmem, vmem, vmem],
        out_specs=vmem,
        scratch_shapes=[pltpu.VMEM((BP, T * E), jnp.float32)],
    )(input_ids.astype(jnp.int32), emb_table,
      params["w1"], params["b1"],
      params["wlr1"], params["blr1"],
      params["w2"], params["b2"])

    return y[:B, 0], y[:B, 1]                       # (y_pred_1, y_pred_2), each (B,)


def prepare_params(raw, T, E, H, HP=128, OUTP=128):
    """Host-side (free) re-layout: transpose, fuse heads, zero-pad to lane/sublane
    multiples (H=50 -> HP=128, 2H -> 2*HP, head outputs -> OUTP=128 lanes)."""
    TE = T * E
    w1 = jnp.zeros((TE, HP), jnp.float32).at[:, :H].set(raw["w_joined"].T)
    b1 = jnp.zeros((1, HP), jnp.float32).at[0, :H].set(raw["b_joined"])

    wlr1 = jnp.zeros((HP, 2 * HP), jnp.float32)
    wlr1 = wlr1.at[:H, :H].set(raw["w_l1"].T)               # left_1
    wlr1 = wlr1.at[:H, HP:HP + H].set(raw["w_r1"].T)        # right_1
    blr1 = jnp.zeros((1, 2 * HP), jnp.float32)
    blr1 = blr1.at[0, :H].set(raw["b_l1"])
    blr1 = blr1.at[0, HP:HP + H].set(raw["b_r1"])

    w2 = jnp.zeros((2 * HP, OUTP), jnp.float32)             # block-diagonal heads
    w2 = w2.at[:H, 0].set(raw["w_l2"][0])                   # left_2  -> lane 0
    w2 = w2.at[HP:HP + H, 1].set(raw["w_r2"][0])            # right_2 -> lane 1
    b2 = jnp.zeros((1, OUTP), jnp.float32)
    b2 = b2.at[0, 0].set(raw["b_l2"][0])
    b2 = b2.at[0, 1].set(raw["b_r2"][0])

    return {"w1": w1, "b1": b1, "wlr1": wlr1, "blr1": blr1, "w2": w2, "b2": b2}


# ----------------------------------------------------------------------------
# Pure-JAX reference (correctness check), using the raw torch-shaped weights
# ----------------------------------------------------------------------------
def reference_forward(input_ids, emb_table, raw):
    enc = emb_table[input_ids]                               # (B, SEQ, E) gather
    emb = enc[:, 1:-1, :]                                    # (B, T, E)
    x = emb.reshape(emb.shape[0], -1)                        # flatten(start_dim=1)
    joined = jax.nn.relu(x @ raw["w_joined"].T + raw["b_joined"])
    y1 = jax.nn.relu(joined @ raw["w_l1"].T + raw["b_l1"]) @ raw["w_l2"].T + raw["b_l2"]
    y2 = jax.nn.relu(joined @ raw["w_r1"].T + raw["b_r1"]) @ raw["w_r2"].T + raw["b_r2"]
    return y1[:, 0], y2[:, 0]


# ----------------------------------------------------------------------------
# Main
# ----------------------------------------------------------------------------
if __name__ == "__main__":
    # Small shapes consistent with the module's forward
    VOCAB = 128        # vocab_size (small stand-in for 30522)
    E = 32             # embedding_size (small stand-in for 768)
    T = 8              # padded_seq_len
    H = 50             # hidden_dim (module default)
    B = 2              # batch
    SEQ = T + 2        # raw sequence; has_start_token=True -> [:, 1:-1] yields T tokens

    key = jax.random.PRNGKey(0)
    ks = jax.random.split(key, 12)

    # RandomEmbeddingModel: Embedding(VOCAB, E, padding_idx=0) -> N(0,1), row 0 zeroed
    emb_table = jax.random.normal(ks[0], (VOCAB, E), jnp.float32)
    emb_table = emb_table.at[0].set(0.0)

    def lin(kw, kb, fan_in, shape_w, shape_b):
        s = 1.0 / jnp.sqrt(fan_in)                           # PyTorch Linear default init range
        return (jax.random.uniform(kw, shape_w, jnp.float32, -s, s),
                jax.random.uniform(kb, shape_b, jnp.float32, -s, s))

    w_joined, b_joined = lin(ks[1], ks[2], T * E, (H, T * E), (H,))
    w_l1, b_l1 = lin(ks[3], ks[4], H, (H, H), (H,))
    w_l2, b_l2 = lin(ks[5], ks[6], H, (1, H), (1,))
    w_r1, b_r1 = lin(ks[7], ks[8], H, (H, H), (H,))
    w_r2, b_r2 = lin(ks[9], ks[10], H, (1, H), (1,))

    raw = {"w_joined": w_joined, "b_joined": b_joined,
           "w_l1": w_l1, "b_l1": b_l1, "w_l2": w_l2, "b_l2": b_l2,
           "w_r1": w_r1, "b_r1": b_r1, "w_r2": w_r2, "b_r2": b_r2}
    params = prepare_params(raw, T, E, H)

    # deterministic input ids (includes a padding token 0)
    input_ids = jax.random.randint(ks[11], (B, SEQ), 0, VOCAB, jnp.int32)
    input_ids = input_ids.at[0, -1].set(0)

    # --- Pallas kernel: gather + flatten + joined MLP + two heads ---
    y1, y2 = range_model_forward(input_ids, emb_table, params)
    y1 = jax.block_until_ready(y1)
    y2 = jax.block_until_ready(y2)

    # sanity check against pure-JAX reference
    r1, r2 = reference_forward(input_ids, emb_table, raw)
    assert y1.shape == (B,) and y2.shape == (B,)
    assert jnp.allclose(y1, r1, atol=1e-5, rtol=1e-5), (y1, r1)
    assert jnp.allclose(y2, r2, atol=1e-5, rtol=1e-5), (y2, r2)

    print("KERNEL_OK")
</pallas_src>

<mosaic_0001>
module attributes {stable_mosaic.version = 11 : i64} {
  func.func @range_model_kernel(%arg0: memref<2x10xi32, #tpu.memory_space<smem>>, %arg1: memref<128x32xf32, #tpu.memory_space<vmem>>, %arg2: memref<256x128xf32, #tpu.memory_space<vmem>>, %arg3: memref<1x128xf32, #tpu.memory_space<vmem>>, %arg4: memref<128x256xf32, #tpu.memory_space<vmem>>, %arg5: memref<1x256xf32, #tpu.memory_space<vmem>>, %arg6: memref<256x128xf32, #tpu.memory_space<vmem>>, %arg7: memref<1x128xf32, #tpu.memory_space<vmem>>, %arg8: memref<8x128xf32, #tpu.memory_space<vmem>>, %arg9: memref<8x256xf32, #tpu.memory_space<vmem>>) attributes {dimension_semantics = [], scalar_prefetch = 0 : i64, scratch_operands = 1 : i64, tpu.core_type = #tpu.core_type<tc>} {
    %cst = arith.constant 0.000000e+00 : f32
    %0 = vector.broadcast %cst : f32 to vector<8x256xf32>
    %c0 = arith.constant 0 : index
    %c0_0 = arith.constant 0 : index
    %1 = vector.load %arg9[%c0, %c0_0] : memref<8x256xf32, #tpu.memory_space<vmem>>, vector<8x256xf32>
    tpu.vector_store %arg9[%c0, %c0_0], %0 {strides = array<i32>} : memref<8x256xf32, #tpu.memory_space<vmem>>, vector<8x256xf32>,
    %c0_1 = arith.constant 0 : index
    %c1 = arith.constant 1 : index
    %2 = memref.load %arg0[%c0_1, %c1] : memref<2x10xi32, #tpu.memory_space<smem>>
    %3 = arith.index_cast %2 : i32 to index
    %c0_2 = arith.constant 0 : index
    %4 = vector.load %arg1[%3, %c0_2] : memref<128x32xf32, #tpu.memory_space<vmem>>, vector<1x32xf32>
    %c0_3 = arith.constant 0 : index
    %c0_4 = arith.constant 0 : index
    %5 = vector.load %arg9[%c0_3, %c0_4] : memref<8x256xf32, #tpu.memory_space<vmem>>, vector<1x32xf32>
    tpu.vector_store %arg9[%c0_3, %c0_4], %4 {strides = array<i32>} : memref<8x256xf32, #tpu.memory_space<vmem>>, vector<1x32xf32>,
    %c0_5 = arith.constant 0 : index
    %c2 = arith.constant 2 : index
    %6 = memref.load %arg0[%c0_5, %c2] : memref<2x10xi32, #tpu.memory_space<smem>>
    %7 = arith.index_cast %6 : i32 to index
    %c0_6 = arith.constant 0 : index
    %8 = vector.load %arg1[%7, %c0_6] : memref<128x32xf32, #tpu.memory_space<vmem>>, vector<1x32xf32>
    %c0_7 = arith.constant 0 : index
    %c32 = arith.constant 32 : index
    %9 = vector.load %arg9[%c0_7, %c32] : memref<8x256xf32, #tpu.memory_space<vmem>>, vector<1x32xf32>
    tpu.vector_store %arg9[%c0_7, %c32], %8 {strides = array<i32>} : memref<8x256xf32, #tpu.memory_space<vmem>>, vector<1x32xf32>,
    %c0_8 = arith.constant 0 : index
    %c3 = arith.constant 3 : index
    %10 = memref.load %arg0[%c0_8, %c3] : memref<2x10xi32, #tpu.memory_space<smem>>
    %11 = arith.index_cast %10 : i32 to index
    %c0_9 = arith.constant 0 : index
    %12 = vector.load %arg1[%11, %c0_9] : memref<128x32xf32, #tpu.memory_space<vmem>>, vector<1x32xf32>
    %c0_10 = arith.constant 0 : index
    %c64 = arith.constant 64 : index
    %13 = vector.load %arg9[%c0_10, %c64] : memref<8x256xf32, #tpu.memory_space<vmem>>, vector<1x32xf32>
    tpu.vector_store %arg9[%c0_10, %c64], %12 {strides = array<i32>} : memref<8x256xf32, #tpu.memory_space<vmem>>, vector<1x32xf32>,
    %c0_11 = arith.constant 0 : index
    %c4 = arith.constant 4 : index
    %14 = memref.load %arg0[%c0_11, %c4] : memref<2x10xi32, #tpu.memory_space<smem>>
    %15 = arith.index_cast %14 : i32 to index
    %c0_12 = arith.constant 0 : index
    %16 = vector.load %arg1[%15, %c0_12] : memref<128x32xf32, #tpu.memory_space<vmem>>, vector<1x32xf32>
    %c0_13 = arith.constant 0 : index
    %c96 = arith.constant 96 : index
    %17 = vector.load %arg9[%c0_13, %c96] : memref<8x256xf32, #tpu.memory_space<vmem>>, vector<1x32xf32>
    tpu.vector_store %arg9[%c0_13, %c96], %16 {strides = array<i32>} : memref<8x256xf32, #tpu.memory_space<vmem>>, vector<1x32xf32>,
    %c0_14 = arith.constant 0 : index
    %c5 = arith.constant 5 : index
    %18 = memref.load %arg0[%c0_14, %c5] : memref<2x10xi32, #tpu.memory_space<smem>>
    %19 = arith.index_cast %18 : i32 to index
    %c0_15 = arith.constant 0 : index
    %20 = vector.load %arg1[%19, %c0_15] : memref<128x32xf32, #tpu.memory_space<vmem>>, vector<1x32xf32>
    %c0_16 = arith.constant 0 : index
    %c128 = arith.constant 128 : index
    %21 = vector.load %arg9[%c0_16, %c128] : memref<8x256xf32, #tpu.memory_space<vmem>>, vector<1x32xf32>
    tpu.vector_store %arg9[%c0_16, %c128], %20 {strides = array<i32>} : memref<8x256xf32, #tpu.memory_space<vmem>>, vector<1x32xf32>,
    %c0_17 = arith.constant 0 : index
    %c6 = arith.constant 6 : index
    %22 = memref.load %arg0[%c0_17, %c6] : memref<2x10xi32, #tpu.memory_space<smem>>
    %23 = arith.index_cast %22 : i32 to index
    %c0_18 = arith.constant 0 : index
    %24 = vector.load %arg1[%23, %c0_18] : memref<128x32xf32, #tpu.memory_space<vmem>>, vector<1x32xf32>
    %c0_19 = arith.constant 0 : index
    %c160 = arith.constant 160 : index
    %25 = vector.load %arg9[%c0_19, %c160] : memref<8x256xf32, #tpu.memory_space<vmem>>, vector<1x32xf32>
    tpu.vector_store %arg9[%c0_19, %c160], %24 {strides = array<i32>} : memref<8x256xf32, #tpu.memory_space<vmem>>, vector<1x32xf32>,
    %c0_20 = arith.constant 0 : index
    %c7 = arith.constant 7 : index
    %26 = memref.load %arg0[%c0_20, %c7] : memref<2x10xi32, #tpu.memory_space<smem>>
    %27 = arith.index_cast %26 : i32 to index
    %c0_21 = arith.constant 0 : index
    %28 = vector.load %arg1[%27, %c0_21] : memref<128x32xf32, #tpu.memory_space<vmem>>, vector<1x32xf32>
    %c0_22 = arith.constant 0 : index
    %c192 = arith.constant 192 : index
    %29 = vector.load %arg9[%c0_22, %c192] : memref<8x256xf32, #tpu.memory_space<vmem>>, vector<1x32xf32>
    tpu.vector_store %arg9[%c0_22, %c192], %28 {strides = array<i32>} : memref<8x256xf32, #tpu.memory_space<vmem>>, vector<1x32xf32>,
    %c0_23 = arith.constant 0 : index
    %c8 = arith.constant 8 : index
    %30 = memref.load %arg0[%c0_23, %c8] : memref<2x10xi32, #tpu.memory_space<smem>>
    %31 = arith.index_cast %30 : i32 to index
    %c0_24 = arith.constant 0 : index
    %32 = vector.load %arg1[%31, %c0_24] : memref<128x32xf32, #tpu.memory_space<vmem>>, vector<1x32xf32>
    %c0_25 = arith.constant 0 : index
    %c224 = arith.constant 224 : index
    %33 = vector.load %arg9[%c0_25, %c224] : memref<8x256xf32, #tpu.memory_space<vmem>>, vector<1x32xf32>
    tpu.vector_store %arg9[%c0_25, %c224], %32 {strides = array<i32>} : memref<8x256xf32, #tpu.memory_space<vmem>>, vector<1x32xf32>,
    %c1_26 = arith.constant 1 : index
    %c1_27 = arith.constant 1 : index
    %34 = memref.load %arg0[%c1_26, %c1_27] : memref<2x10xi32, #tpu.memory_space<smem>>
    %35 = arith.index_cast %34 : i32 to index
    %c0_28 = arith.constant 0 : index
    %36 = vector.load %arg1[%35, %c0_28] : memref<128x32xf32, #tpu.memory_space<vmem>>, vector<1x32xf32>
    %c1_29 = arith.constant 1 : index
    %c0_30 = arith.constant 0 : index
    %37 = vector.load %arg9[%c1_29, %c0_30] : memref<8x256xf32, #tpu.memory_space<vmem>>, vector<1x32xf32>
    tpu.vector_store %arg9[%c1_29, %c0_30], %36 {strides = array<i32>} : memref<8x256xf32, #tpu.memory_space<vmem>>, vector<1x32xf32>,
    %c1_31 = arith.constant 1 : index
    %c2_32 = arith.constant 2 : index
    %38 = memref.load %arg0[%c1_31, %c2_32] : memref<2x10xi32, #tpu.memory_space<smem>>
    %39 = arith.index_cast %38 : i32 to index
    %c0_33 = arith.constant 0 : index
    %40 = vector.load %arg1[%39, %c0_33] : memref<128x32xf32, #tpu.memory_space<vmem>>, vector<1x32xf32>
    %c1_34 = arith.constant 1 : index
    %c32_35 = arith.constant 32 : index
    %41 = vector.load %arg9[%c1_34, %c32_35] : memref<8x256xf32, #tpu.memory_space<vmem>>, vector<1x32xf32>
    tpu.vector_store %arg9[%c1_34, %c32_35], %40 {strides = array<i32>} : memref<8x256xf32, #tpu.memory_space<vmem>>, vector<1x32xf32>,
    %c1_36 = arith.constant 1 : index
    %c3_37 = arith.constant 3 : index
    %42 = memref.load %arg0[%c1_36, %c3_37] : memref<2x10xi32, #tpu.memory_space<smem>>
    %43 = arith.index_cast %42 : i32 to index
    %c0_38 = arith.constant 0 : index
    %44 = vector.load %arg1[%43, %c0_38] : memref<128x32xf32, #tpu.memory_space<vmem>>, vector<1x32xf32>
    %c1_39 = arith.constant 1 : index
    %c64_40 = arith.constant 64 : index
    %45 = vector.load %arg9[%c1_39, %c64_40] : memref<8x256xf32, #tpu.memory_space<vmem>>, vector<1x32xf32>
    tpu.vector_store %arg9[%c1_39, %c64_40], %44 {strides = array<i32>} : memref<8x256xf32, #tpu.memory_space<vmem>>, vector<1x32xf32>,
    %c1_41 = arith.constant 1 : index
    %c4_42 = arith.constant 4 : index
    %46 = memref.load %arg0[%c1_41, %c4_42] : memref<2x10xi32, #tpu.memory_space<smem>>
    %47 = arith.index_cast %46 : i32 to index
    %c0_43 = arith.constant 0 : index
    %48 = vector.load %arg1[%47, %c0_43] : memref<128x32xf32, #tpu.memory_space<vmem>>, vector<1x32xf32>
    %c1_44 = arith.constant 1 : index
    %c96_45 = arith.constant 96 : index
    %49 = vector.load %arg9[%c1_44, %c96_45] : memref<8x256xf32, #tpu.memory_space<vmem>>, vector<1x32xf32>
    tpu.vector_store %arg9[%c1_44, %c96_45], %48 {strides = array<i32>} : memref<8x256xf32, #tpu.memory_space<vmem>>, vector<1x32xf32>,
    %c1_46 = arith.constant 1 : index
    %c5_47 = arith.constant 5 : index
    %50 = memref.load %arg0[%c1_46, %c5_47] : memref<2x10xi32, #tpu.memory_space<smem>>
    %51 = arith.index_cast %50 : i32 to index
    %c0_48 = arith.constant 0 : index
    %52 = vector.load %arg1[%51, %c0_48] : memref<128x32xf32, #tpu.memory_space<vmem>>, vector<1x32xf32>
    %c1_49 = arith.constant 1 : index
    %c128_50 = arith.constant 128 : index
    %53 = vector.load %arg9[%c1_49, %c128_50] : memref<8x256xf32, #tpu.memory_space<vmem>>, vector<1x32xf32>
    tpu.vector_store %arg9[%c1_49, %c128_50], %52 {strides = array<i32>} : memref<8x256xf32, #tpu.memory_space<vmem>>, vector<1x32xf32>,
    %c1_51 = arith.constant 1 : index
    %c6_52 = arith.constant 6 : index
    %54 = memref.load %arg0[%c1_51, %c6_52] : memref<2x10xi32, #tpu.memory_space<smem>>
    %55 = arith.index_cast %54 : i32 to index
    %c0_53 = arith.constant 0 : index
    %56 = vector.load %arg1[%55, %c0_53] : memref<128x32xf32, #tpu.memory_space<vmem>>, vector<1x32xf32>
    %c1_54 = arith.constant 1 : index
    %c160_55 = arith.constant 160 : index
    %57 = vector.load %arg9[%c1_54, %c160_55] : memref<8x256xf32, #tpu.memory_space<vmem>>, vector<1x32xf32>
    tpu.vector_store %arg9[%c1_54, %c160_55], %56 {strides = array<i32>} : memref<8x256xf32, #tpu.memory_space<vmem>>, vector<1x32xf32>,
    %c1_56 = arith.constant 1 : index
    %c7_57 = arith.constant 7 : index
    %58 = memref.load %arg0[%c1_56, %c7_57] : memref<2x10xi32, #tpu.memory_space<smem>>
    %59 = arith.index_cast %58 : i32 to index
    %c0_58 = arith.constant 0 : index
    %60 = vector.load %arg1[%59, %c0_58] : memref<128x32xf32, #tpu.memory_space<vmem>>, vector<1x32xf32>
    %c1_59 = arith.constant 1 : index
    %c192_60 = arith.constant 192 : index
    %61 = vector.load %arg9[%c1_59, %c192_60] : memref<8x256xf32, #tpu.memory_space<vmem>>, vector<1x32xf32>
    tpu.vector_store %arg9[%c1_59, %c192_60], %60 {strides = array<i32>} : memref<8x256xf32, #tpu.memory_space<vmem>>, vector<1x32xf32>,
    %c1_61 = arith.constant 1 : index
    %c8_62 = arith.constant 8 : index
    %62 = memref.load %arg0[%c1_61, %c8_62] : memref<2x10xi32, #tpu.memory_space<smem>>
    %63 = arith.index_cast %62 : i32 to index
    %c0_63 = arith.constant 0 : index
    %64 = vector.load %arg1[%63, %c0_63] : memref<128x32xf32, #tpu.memory_space<vmem>>, vector<1x32xf32>
    %c1_64 = arith.constant 1 : index
    %c224_65 = arith.constant 224 : index
    %65 = vector.load %arg9[%c1_64, %c224_65] : memref<8x256xf32, #tpu.memory_space<vmem>>, vector<1x32xf32>
    tpu.vector_store %arg9[%c1_64, %c224_65], %64 {strides = array<i32>} : memref<8x256xf32, #tpu.memory_space<vmem>>, vector<1x32xf32>,
    %c0_66 = arith.constant 0 : index
    %c0_67 = arith.constant 0 : index
    %66 = vector.load %arg9[%c0_66, %c0_67] : memref<8x256xf32, #tpu.memory_space<vmem>>, vector<8x256xf32>
    %c0_68 = arith.constant 0 : index
    %c0_69 = arith.constant 0 : index
    %67 = vector.load %arg2[%c0_68, %c0_69] : memref<256x128xf32, #tpu.memory_space<vmem>>, vector<256x128xf32>
    %cst_70 = arith.constant dense<0.000000e+00> : vector<8x128xf32>
    %68 = tpu.matmul %66, %67, %cst_70 {dimension_numbers = #tpu.dot_dimension_numbers<[1], [0], [0], [1], [0, 0, 1, 1], [], []>} : vector<8x256xf32>, vector<256x128xf32>, vector<8x128xf32> -> vector<8x128xf32>
    %c0_71 = arith.constant 0 : index
    %c0_72 = arith.constant 0 : index
    %69 = vector.load %arg3[%c0_71, %c0_72] : memref<1x128xf32, #tpu.memory_space<vmem>>, vector<1x128xf32>
    %70 = vector.broadcast %69 : vector<1x128xf32> to vector<8x128xf32>
    %71 = arith.addf %68, %70 : vector<8x128xf32>
    %cst_73 = arith.constant 0.000000e+00 : f32
    %72 = vector.broadcast %cst_73 : f32 to vector<8x128xf32>
    %73 = arith.maximumf %71, %72 : vector<8x128xf32>
    %c0_74 = arith.constant 0 : index
    %c0_75 = arith.constant 0 : index
    %74 = vector.load %arg4[%c0_74, %c0_75] : memref<128x256xf32, #tpu.memory_space<vmem>>, vector<128x256xf32>
    %cst_76 = arith.constant dense<0.000000e+00> : vector<8x256xf32>
    %75 = tpu.matmul %73, %74, %cst_76 {dimension_numbers = #tpu.dot_dimension_numbers<[1], [0], [0], [1], [0, 0, 1, 1], [], []>} : vector<8x128xf32>, vector<128x256xf32>, vector<8x256xf32> -> vector<8x256xf32>
    %c0_77 = arith.constant 0 : index
    %c0_78 = arith.constant 0 : index
    %76 = vector.load %arg5[%c0_77, %c0_78] : memref<1x256xf32, #tpu.memory_space<vmem>>, vector<1x256xf32>
    %77 = vector.broadcast %76 : vector<1x256xf32> to vector<8x256xf32>
    %78 = arith.addf %75, %77 : vector<8x256xf32>
    %cst_79 = arith.constant 0.000000e+00 : f32
    %79 = vector.broadcast %cst_79 : f32 to vector<8x256xf32>
    %80 = arith.maximumf %78, %79 : vector<8x256xf32>
    %c0_80 = arith.constant 0 : index
    %c0_81 = arith.constant 0 : index
    %81 = vector.load %arg6[%c0_80, %c0_81] : memref<256x128xf32, #tpu.memory_space<vmem>>, vector<256x128xf32>
    %cst_82 = arith.constant dense<0.000000e+00> : vector<8x128xf32>
    %82 = tpu.matmul %80, %81, %cst_82 {dimension_numbers = #tpu.dot_dimension_numbers<[1], [0], [0], [1], [0, 0, 1, 1], [], []>} : vector<8x256xf32>, vector<256x128xf32>, vector<8x128xf32> -> vector<8x128xf32>
    %c0_83 = arith.constant 0 : index
    %c0_84 = arith.constant 0 : index
    %83 = vector.load %arg7[%c0_83, %c0_84] : memref<1x128xf32, #tpu.memory_space<vmem>>, vector<1x128xf32>
    %84 = vector.broadcast %83 : vector<1x128xf32> to vector<8x128xf32>
    %85 = arith.addf %82, %84 : vector<8x128xf32>
    %c0_85 = arith.constant 0 : index
    %c0_86 = arith.constant 0 : index
    %86 = vector.load %arg8[%c0_85, %c0_86] : memref<8x128xf32, #tpu.memory_space<vmem>>, vector<8x128xf32>
    tpu.vector_store %arg8[%c0_85, %c0_86], %85 {strides = array<i32>} : memref<8x128xf32, #tpu.memory_space<vmem>>, vector<8x128xf32>,
    return
  }
}

</mosaic_0001>

<bundles_post_ra>
// kernel: tpu_custom_call.1
= control target key start
LH: loop header
LB: loop body
LE: loop exit
PB: predicated region body
PF: predicated region fallthrough
CT: control target
= control target key end

     0   :  { %13 = vsyncpa [#allocation6], 0  ;;  %s1109_s0 = inlined_call_operand.vmem [shape: s32[2,10], index: 0, kind: input, shape index: {}]   ;;  %s1110_s1 = inlined_call_operand.vmem [shape: f32[128,32], index: 1, kind: input, shape index: {}]   ;;  %s1111_s2 = inlined_call_operand.hbm [shape: f32[256,128], index: 2, kind: input, shape index: {}]   ;;  %s1112_s3 = inlined_call_operand.vmem [shape: f32[1,128], index: 3, kind: input, shape index: {}]   ;;  %s1113_s4 = inlined_call_operand.hbm [shape: f32[128,256], index: 4, kind: input, shape index: {}]   ;;  %s1114_s5 = inlined_call_operand.vmem [shape: f32[1,256], index: 5, kind: input, shape index: {}]   ;;  %s1115_s6 = inlined_call_operand.hbm [shape: f32[256,128], index: 6, kind: input, shape index: {}]   ;;  %s1116_s7 = inlined_call_operand.vmem [shape: f32[1,128], index: 7, kind: input, shape index: {}]   ;;  %s1117_s8 = inlined_call_operand.hbm [shape: f32[8,128], index: 8, kind: output, shape index: {}]  }
   0x1   :  { %14 = vsyncpa [#allocation4], 0 }
   0x2   :  { %15 = vsyncpa [#allocation9], 0 }
   0x3   :  { %16 = vsyncpa [#allocation5], 0  ;;  %s879_s27 = smov [#allocation8]   ;;  %s23_s9 = sshll.u32 %s1109_s0, 4  ;;  %s24_s9 = int_to_ptr.vmem [resolvable:$true] %s23_s9 }
   0x4   :  { %s48_s28 = sshll.u32 %s879_s27, 4  ;;  %s771_s12 = scalar_lea.hbm %s1113_s4, 4096  ;;  %s49_s28 = int_to_ptr.vmem [resolvable:$true] %s48_s28 }
   0x5   :  { %p772_p0 = scmp.ne.s32.totalorder %s1113_s4, %s771_s12  ;;  %p775_p1 = scmp.lt.u32.totalorder %s771_s12, %s1113_s4 }
   0x7   :  { %p777_p2 = pnand %p775_p1, %p772_p0 }
   0x9   :  { %780 = shalt.err (!%p777_p2)
}
   0xa   :  { %s781_s17 = scalar_lea.vmem %s49_s28, 4096  ;;  %p786_p4 = scmp.lt.s32.totalorder %s49_s28, %s49_s28 }
   0xb   :  { %p782_p3 = scmp.ne.s32.totalorder %s49_s28, %s781_s17  ;;  %p787_p5 = scmp.lt.s32.totalorder %s781_s17, %s781_s17 }
   0xd   :  { %p788_p6 = por %p787_p5, %p786_p4 }
   0xf   :  { %p789_p7 = pnand %p788_p6, %p782_p3 }
  0x11   :  { %792 = shalt.err (!%p789_p7)
}
  0x12   :  { %s880_s0 = smov 256   ;;  %s881_s18 = smov 16  }
  0x13   :  { %54 = dma.hbm_to_vmem [thread:$0]  %s1113_s4, 4096, %s49_s28, [#allocation9], %s880_s0, %s880_s0, %s881_s18  }
  0x14   :  { %s793_s21 = scalar_lea.vmem %s24_s9, 32  ;;  %p798_p9 = scmp.lt.s32.totalorder %s24_s9, %s24_s9 }
  0x15   :  { %p794_p8 = scmp.ne.s32.totalorder %s24_s9, %s793_s21  ;;  %p799_p10 = scmp.lt.s32.totalorder %s793_s21, %s793_s21 }
  0x17   :  { %p800_p11 = por %p799_p10, %p798_p9 }
  0x19   :  { %p801_p12 = pnand %p800_p11, %p794_p8 }
  0x1b   :  { %804 = shalt.err (!%p801_p12)
}
  0x1c   :  { %s882_s22 = smov [#allocation3]   ;;  %s883_s23 = smov [#allocation7]  }
  0x1d   :  { %26 = dma.vmem_to_smem %s24_s9, 32, %s882_s22, [#allocation6]  }
  0x1e   :  { %s34_s24 = sshll.u32 %s883_s23, 4  ;;  %s805_s27 = scalar_lea.hbm %s1111_s2, 4096  ;;  %s35_s24 = int_to_ptr.vmem [resolvable:$true] %s34_s24 }
  0x1f   :  { %p806_p13 = scmp.ne.s32.totalorder %s1111_s2, %s805_s27  ;;  %p809_p0 = scmp.lt.u32.totalorder %s805_s27, %s1111_s2 }
  0x21   :  { %p811_p1 = pnand %p809_p0, %p806_p13 }
  0x23   :  { %814 = shalt.err (!%p811_p1)
}
  0x24   :  { %s815_s10 = scalar_lea.vmem %s35_s24, 4096  ;;  %p820_p3 = scmp.lt.s32.totalorder %s35_s24, %s35_s24 }
  0x25   :  { %p816_p2 = scmp.ne.s32.totalorder %s35_s24, %s815_s10  ;;  %p821_p4 = scmp.lt.s32.totalorder %s815_s10, %s815_s10 }
  0x27   :  { %p822_p5 = por %p821_p4, %p820_p3 }
  0x29   :  { %p823_p6 = pnand %p822_p5, %p816_p2 }
  0x2b   :  { %826 = shalt.err (!%p823_p6)
}
  0x2c   :  { %s884_s9 = smov 128   ;;  %s885_s11 = smov 8  }
  0x2d   :  { %40 = dma.hbm_to_vmem [thread:$0]  %s1111_s2, 4096, %s35_s24, [#allocation4], %s884_s9, %s884_s9, %s885_s11  }
  0x2e   :  { %s886_s14 = smov [#allocation10]   ;;  %s827_s0 = scalar_lea.hbm %s1115_s6, 4096 }
  0x2f   :  { %s62_s15 = sshll.u32 %s886_s14, 4  ;;  %p828_p7 = scmp.ne.s32.totalorder %s1115_s6, %s827_s0  ;;  %s63_s15 = int_to_ptr.vmem [resolvable:$true] %s62_s15 }
  0x30   :  { %p831_p8 = scmp.lt.u32.totalorder %s827_s0, %s1115_s6 }
  0x32   :  { %p833_p9 = pnand %p831_p8, %p828_p7 }
  0x34   :  { %836 = shalt.err (!%p833_p9)
}
  0x35   :  { %s837_s22 = scalar_lea.vmem %s63_s15, 4096  ;;  %p842_p11 = scmp.lt.s32.totalorder %s63_s15, %s63_s15 }
  0x36   :  { %p838_p10 = scmp.ne.s32.totalorder %s63_s15, %s837_s22  ;;  %p843_p12 = scmp.lt.s32.totalorder %s837_s22, %s837_s22 }
  0x38   :  { %p844_p13 = por %p843_p12, %p842_p11 }
  0x3a   :  { %p845_p0 = pnand %p844_p13, %p838_p10 }
  0x3c   :  { %848 = shalt.err (!%p845_p0)
}
  0x3d   :  { %68 = dma.hbm_to_vmem [thread:$0]  %s1115_s6, 4096, %s63_s15, [#allocation9], %s884_s9, %s884_s9, %s885_s11  }
  0x3e   :  { %871 = dma.done.wait [#allocation6], 32  }
  0x3f   :  { %872 = vsyncadd [#allocation6], 4294967264 }
  0x40   :  { %873 = dma.done.wait [#allocation4], 4096  }
  0x41   :  { %874 = vsyncadd [#allocation4], 4294963200 }
  0x42   :  { %875 = dma.done.wait [#allocation9], 8192  }
  0x43   :  { %876 = vsyncadd [#allocation9], 4294959104 }
  0x44   :  { %83 = sfence }
  0x45   :  { %s976_s24 = sld [smem:[#allocation3 + $0x6]]  ;;  %v220_v0 = vld [vmem:[#allocation7 + $0x80] sm:$0xff]  ;;  %v221_v1 = vld [vmem:[#allocation7 + $0x88] sm:$0xff]  ;;  %s978_s25 = sld [smem:[#allocation3 + $0x2]]  ;;  %v222_v6 = vld [vmem:[#allocation7 + $0x90] sm:$0xff]  ;;  %v887_v7 = vmov 0.0  }
  0x46   :  { %v204_v2 = vld [vmem:[#allocation7] sm:$0xff]  ;;  %s980_s26 = sld [smem:[#allocation3 + $0x86]]  ;;  %v662_v3 = vpack.c.bf16 %v221_v1, %v220_v0  ;;  %v205_v4 = vld [vmem:[#allocation7 + $0x8] sm:$0xff]  ;;  %s982_s27 = sld [smem:[#allocation3 + $0x7]]  ;;  %85 = vst [vmem:[#allocation2 + $0x8] sm:$0xff] %v887_v7  ;;  %84 = vst [vmem:[#allocation2] sm:$0xff] %v887_v7  ;;  %422 = vmatprep.mubr.f32.mxu1 %v887_v7 }
  0x47   :  { %v664_v5 = vpack.c.bf16 %v205_v4, %v204_v2  ;;  %s984_s6 = sld [smem:[#allocation3 + $0x82]]  ;;  %s986_s29 = sld [smem:[#allocation3 + $0x87]]  ;;  %v223_v8 = vld [vmem:[#allocation7 + $0x98] sm:$0xff]  ;;  %v206_v9 = vld [vmem:[#allocation7 + $0x10] sm:$0xff]  ;;  %v224_v12 = vld [vmem:[#allocation7 + $0xa0] sm:$0xff]  ;;  %vm89_vm0 = vcmask 253952  }
  0x48   :  { %663 = vmatprep.subr.bf16.mxu0 %v662_v3  ;;  %v666_v10 = vpack.c.bf16 %v223_v8, %v222_v6  ;;  %v207_v11 = vld [vmem:[#allocation7 + $0x18] sm:$0xff]  ;;  %s988_s30 = sld [smem:[#allocation3 + $0x3]]  ;;  %v225_v14 = vld [vmem:[#allocation7 + $0xa8] sm:$0xff]  ;;  %v208_v15 = vld [vmem:[#allocation7 + $0x20] sm:$0xff]  ;;  %s994_s9 = sld [smem:[#allocation3 + $0x8]]  ;;  %vm98_vm1 = vcmask 516352  }
  0x49   :  { %665 = vmatpush3.bf16.msra.mxu0 %v664_v5  ;;  %v668_v13 = vpack.c.bf16 %v207_v11, %v206_v9  ;;  %v670_v16 = vpack.c.bf16 %v225_v14, %v224_v12  ;;  %v209_v17 = vld [vmem:[#allocation7 + $0x28] sm:$0xff]  ;;  %v226_v18 = vld [vmem:[#allocation7 + $0xb0] sm:$0xff]  ;;  %v227_v19 = vld [vmem:[#allocation7 + $0xb8] sm:$0xff]  ;;  %s888_s17 = smov 32   ;;  %s1014_s2 = sld [smem:[#allocation3 + $0x83]]  ;;  %vm107_vm2 = vcmask 778752  }
  0x4a   :  { %667 = vmatprep.subr.bf16.mxu0 %v666_v10  ;;  %v672_v22 = vpack.c.bf16 %v209_v17, %v208_v15  ;;  %v674_v24 = vpack.c.bf16 %v227_v19, %v226_v18  ;;  %v210_v25 = vld [vmem:[#allocation7 + $0x30] sm:$0xff]  ;;  %v211_v26 = vld [vmem:[#allocation7 + $0x38] sm:$0xff]  ;;  %s1016_s23 = sld [smem:[#allocation3 + $0x88]]  ;;  %v228_v28 = vld [vmem:[#allocation7 + $0xc0] sm:$0xff]  ;;  %s889_s4 = smov 64   ;;  %vm116_vm3 = vcmask 1041152  }
  0x4b   :  { %s123_s10 = scalar_lea.vmem %s1110_s1, %s976_s24  ;;  %s92_s13 = scalar_lea.vmem %s1110_s1, %s978_s25  ;;  %v229_v29 = vld [vmem:[#allocation7 + $0xc8] sm:$0xff]  ;;  %v676_v31 = vpack.c.bf16 %v211_v26, %v210_v25  ;;  %v212_v33 = vld [vmem:[#allocation7 + $0x40] sm:$0xff]  ;;  %v230_v36 = vld [vmem:[#allocation7 + $0xd0] sm:$0xff] }
  0x4c   :  { %v124_v20 = vld [vmem:[%s123_s10] sm:$0x1]  ;;  %s179_s16 = scalar_lea.vmem %s1110_s1, %s980_s26  ;;  %s131_s19 = scalar_lea.vmem %s1110_s1, %s982_s27  ;;  %v678_v32 = vpack.c.bf16 %v229_v29, %v228_v28  ;;  %v213_v34 = vld [vmem:[#allocation7 + $0x48] sm:$0xff]  ;;  %v231_v37 = vld [vmem:[#allocation7 + $0xd8] sm:$0xff] }
  0x4d   :  { %126 = vrot.lane.b32.xlu0 %v124_v20, %s888_s17  ;;  %v93_v21 = vld [vmem:[%s92_s13] sm:$0x1]  ;;  %669 = vmatpush3.bf16.msra.mxu0 %v668_v13  ;;  %s151_s22 = scalar_lea.vmem %s1110_s1, %s984_s6  ;;  %s187_s26 = scalar_lea.vmem %s1110_s1, %s986_s29  ;;  %v680_v38 = vpack.c.bf16 %v213_v34, %v212_v33  ;;  %v682_v40 = vpack.c.bf16 %v231_v37, %v230_v36  ;;  %v215_v42 = vld [vmem:[#allocation7 + $0x58] sm:$0xff]  ;;  %v232_v44 = vld [vmem:[#allocation7 + $0xe0] sm:$0xff] }
  0x4e   :  { %95 = vrot.lane.b32.xlu1 %v93_v21, %s888_s17  ;;  %v180_v23 = vld [vmem:[%s179_s16] sm:$0x1]  ;;  %671 = vmatprep.subr.bf16.mxu0 %v670_v16  ;;  %s1023_s27 = sld [smem:[#allocation3 + $0x4]]  ;;  %s1025_s6 = sld [smem:[#allocation3 + $0x5]]  ;;  %v233_v45 = vld [vmem:[#allocation7 + $0xe8] sm:$0xff]  ;;  %v216_v53 = vld [vmem:[#allocation7 + $0x60] sm:$0xff] }
  0x4f   :  { %v132_v27 = vld [vmem:[%s131_s19] sm:$0x1]  ;;  %s1028_s28 = sld [smem:[#allocation3 + $0x1]]  ;;  %s1030_s10 = sld [smem:[#allocation3 + $0x85]]  ;;  %v686_v52 = vpack.c.bf16 %v233_v45, %v232_v44  ;;  %v217_v54 = vld [vmem:[#allocation7 + $0x68] sm:$0xff]  ;;  %v235_v57 = vld [vmem:[#allocation7 + $0xf8] sm:$0xff] }
  0x50   :  { %v152_v30 = vld [vmem:[%s151_s22] sm:$0x1]  ;;  %s101_s12 = scalar_lea.vmem %s1110_s1, %s988_s30  ;;  %s1036_s13 = sld [smem:[#allocation3 + $0x81]]  ;;  %v219_v60 = vld [vmem:[#allocation7 + $0x78] sm:$0xff]  ;;  %v688_v61 = vpack.c.bf16 %v217_v54, %v216_v53  ;;  %v315_v62 = vld [vmem:[#allocation8 + $0x8] sm:$0xff] }
  0x51   :  { %182 = vrot.lane.b32.xlu0 %v180_v23, %s888_s17  ;;  %673 = vmatpush3.bf16.msra.mxu0 %v672_v22  ;;  %v188_v35 = vld [vmem:[%s187_s26] sm:$0x1]  ;;  %s139_s16 = scalar_lea.vmem %s1110_s1, %s994_s9  ;;  %s1042_s0 = sld [smem:[#allocation3 + $0x84]]  ;;  %v317_v63 = vld [vmem:[#allocation8 + $0x18] sm:$0xff]  ;;  %v314_v0 = vld [vmem:[#allocation8] sm:$0xff] }
  0x52   :  { %134 = vrot.lane.b32.xlu1 %v132_v27, %s889_s4  ;;  %675 = vmatprep.subr.bf16.mxu0 %v674_v24  ;;  %v102_v39 = vld [vmem:[%s101_s12] sm:$0x1]  ;;  %s159_s19 = scalar_lea.vmem %s1110_s1, %s1014_s2  ;;  %s195_s20 = scalar_lea.vmem %s1110_s1, %s1016_s23  ;;  %v694_v2 = vpack.c.bf16 %v317_v63, %v315_v62  ;;  %v319_v4 = vld [vmem:[#allocation8 + $0x28] sm:$0xff]  ;;  %v321_v5 = vld [vmem:[#allocation8 + $0x38] sm:$0xff] }
  0x53   :  { %v214_v41 = vld [vmem:[#allocation7 + $0x50] sm:$0xff]  ;;  %v698_v8 = vpack.c.bf16 %v321_v5, %v319_v4  ;;  %v318_v9 = vld [vmem:[#allocation8 + $0x20] sm:$0xff]  ;;  %v323_v12 = vld [vmem:[#allocation8 + $0x48] sm:$0xff]  ;;  %s891_s9 = smov [#allocation11]  }
  0x54   :  { %v140_v43 = vld [vmem:[%s139_s16] sm:$0x1]  ;;  %s119_s24 = scalar_lea.vmem %s1110_s1, %s1025_s6  ;;  %s110_s15 = scalar_lea.vmem %s1110_s1, %s1023_s27  ;;  %v684_v50 = vpack.c.bf16 %v215_v42, %v214_v41  ;;  %695 = vmatprep.subr.bf16.mxu1 %v694_v2  ;;  %v325_v13 = vld [vmem:[#allocation8 + $0x58] sm:$0xff]  ;;  %v322_v16 = vld [vmem:[#allocation8 + $0x40] sm:$0xff] }
  0x55   :  { %154 = vrot.lane.b32.xlu0 %v152_v30, %s888_s17  ;;  %677 = vmatpush3.bf16.msra.mxu0 %v676_v31  ;;  %v120_v46 = vld [vmem:[%s119_s24] sm:$0x1]  ;;  %s87_s26 = scalar_lea.vmem %s1110_s1, %s1028_s28  ;;  %s175_s12 = scalar_lea.vmem %s1110_s1, %s1030_s10  ;;  %v702_v15 = vpack.c.bf16 %v325_v13, %v323_v12  ;;  %v327_v18 = vld [vmem:[#allocation8 + $0x68] sm:$0xff]  ;;  %v329_v19 = vld [vmem:[#allocation8 + $0x78] sm:$0xff] }
  0x56   :  { %190 = vrot.lane.b32.xlu1 %v188_v35, %s889_s4  ;;  %679 = vmatprep.subr.bf16.mxu0 %v678_v32  ;;  %v160_v47 = vld [vmem:[%s159_s19] sm:$0x1]  ;;  %121 = vst.msk [vmem:[#allocation2 + $0x8] sm:$0x1] %vm89_vm0, %v120_v46  ;;  %s147_s30 = scalar_lea.vmem %s1110_s1, %s1036_s13  ;;  %s890_s28 = smov 96   ;;  %v706_v21 = vpack.c.bf16 %v329_v19, %v327_v18  ;;  %v326_v22 = vld [vmem:[#allocation8 + $0x60] sm:$0xff] }
  0x57   :  { %v88_v48 = vld [vmem:[%s87_s26] sm:$0x1]  ;;  %s167_s13 = scalar_lea.vmem %s1110_s1, %s1042_s0  ;;  %v331_v24 = vld [vmem:[#allocation8 + $0x88] sm:$0xff]  ;;  %v333_v25 = vld [vmem:[#allocation8 + $0x98] sm:$0xff]  ;;  %s547_s17 = sshll.u32 %s891_s9, 4  ;;  %s548_s17 = int_to_ptr.vmem [resolvable:$true] %s547_s17 }
  0x58   :  { %v176_v49 = vld [vmem:[%s175_s12] sm:$0x1]  ;;  %90 = vst.msk [vmem:[#allocation2] sm:$0x1] %vm89_vm0, %v88_v48  ;;  %v710_v27 = vpack.c.bf16 %v333_v25, %v331_v24  ;;  %v330_v28 = vld [vmem:[#allocation8 + $0x80] sm:$0xff]  ;;  %v335_v30 = vld [vmem:[#allocation8 + $0xa8] sm:$0xff]  ;;  %p854_p2 = scmp.lt.s32.totalorder %s548_s17, %s548_s17 }
  0x59   :  { %104 = vrot.lane.b32.xlu0 %v102_v39, %s889_s4  ;;  %681 = vmatpush3.bf16.msra.mxu0 %v680_v38  ;;  %177 = vst.msk [vmem:[#allocation2 + $0x9] sm:$0x1] %vm89_vm0, %v176_v49  ;;  %v148_v51 = vld [vmem:[%s147_s30] sm:$0x1]  ;;  %v337_v31 = vld [vmem:[#allocation8 + $0xb8] sm:$0xff]  ;;  %v334_v34 = vld [vmem:[#allocation8 + $0xa0] sm:$0xff] }
  0x5a   :  { %142 = vrot.lane.b32.xlu1 %v140_v43, %s890_s28  ;;  %683 = vmatprep.subr.bf16.mxu0 %v682_v40  ;;  %v196_v55 = vld [vmem:[%s195_s20] sm:$0x1]  ;;  %149 = vst.msk [vmem:[#allocation2 + $0x1] sm:$0x1] %vm89_vm0, %v148_v51  ;;  %v714_v33 = vpack.c.bf16 %v337_v31, %v335_v30  ;;  %v339_v51 = vld [vmem:[#allocation8 + $0xc8] sm:$0xff]  ;;  %v338_v54 = vld [vmem:[#allocation8 + $0xc0] sm:$0xff] }
  0x5b   :  { %v234_v56 = vld [vmem:[#allocation7 + $0xf0] sm:$0xff]  ;;  %v447_v63 = vld [vmem:[#allocation10 + $0x80] sm:$0xff]  ;;  %v450_v5 = vld [vmem:[#allocation10 + $0x98] sm:$0xff] }
  0x5c   :  { %v111_v58 = vld [vmem:[%s110_s15] sm:$0x1]  ;;  %v690_v1 = vpack.c.bf16 %v235_v57, %v234_v56  ;;  %v343_v57 = vld [vmem:[#allocation8 + $0xe8] sm:$0xff] }
  0x5d   :  { %v218_v59 = vld [vmem:[#allocation7 + $0x70] sm:$0xff]  ;;  %162 = vrot.lane.b32.xlu0 %v160_v47, %s889_s4  ;;  %685 = vmatpush3.bf16.msra.mxu0 %v684_v50 }
  0x5e   :  { %198 = vrot.lane.b32.xlu1 %v196_v55, %s890_s28  ;;  %687 = vmatprep.subr.bf16.mxu0 %v686_v52  ;;  %v316_v3 = vld [vmem:[#allocation8 + $0x10] sm:$0xff]  ;;  %v692_v11 = vpack.c.bf16 %v219_v60, %v218_v59  ;;  %v341_v52 = vld [vmem:[#allocation8 + $0xd8] sm:$0xff]  ;;  %v342_v60 = vld [vmem:[#allocation8 + $0xe0] sm:$0xff] }
  0x5f   :  { %v168_v6 = vld [vmem:[%s167_s13] sm:$0x1]  ;;  %v696_v7 = vpack.c.bf16 %v316_v3, %v314_v0  ;;  %v718_v53 = vpack.c.bf16 %v341_v52, %v339_v51  ;;  %v448_v0 = vld [vmem:[#allocation10 + $0x88] sm:$0xff]  ;;  %v446_v51 = vld [vmem:[#allocation10 + $0x78] sm:$0xff] }
  0x60   :  { %v320_v10 = vld [vmem:[#allocation8 + $0x30] sm:$0xff]  ;;  %v726_v2 = vpack.c.bf16 %v448_v0, %v447_v63  ;;  %v432_v3 = vld [vmem:[#allocation10 + $0x8] sm:$0xff] }
  0x61   :  { %113 = vrot.lane.b32.xlu0 %v111_v58, %s890_s28  ;;  %689 = vmatpush3.bf16.msra.mxu0 %v688_v61  ;;  %v700_v14 = vpack.c.bf16 %v320_v10, %v318_v9  ;;  %v324_v17 = vld [vmem:[#allocation8 + $0x50] sm:$0xff]  ;;  %v345_v58 = vld [vmem:[#allocation8 + $0xf8] sm:$0xff]  ;;  %v451_v10 = vld [vmem:[#allocation10 + $0xa0] sm:$0xff] }
  0x62   :  { %170 = vrot.lane.b32.xlu1 %v168_v6, %s890_s28  ;;  %691 = vmatprep.subr.bf16.mxu0 %v690_v1  ;;  %v704_v20 = vpack.c.bf16 %v324_v17, %v322_v16  ;;  %v328_v23 = vld [vmem:[#allocation8 + $0x70] sm:$0xff]  ;;  %v722_v59 = vpack.c.bf16 %v345_v58, %v343_v57  ;;  %v431_v1 = vld [vmem:[#allocation10] sm:$0xff]  ;;  %v434_v9 = vld [vmem:[#allocation10 + $0x18] sm:$0xff] }
  0x63   :  { %697 = vmatpush1.bf16.msra.mxu1 %v696_v7  ;;  %v708_v26 = vpack.c.bf16 %v328_v23, %v326_v22  ;;  %v332_v29 = vld [vmem:[#allocation8 + $0x90] sm:$0xff]  ;;  %v728_v6 = vpack.c.bf16 %v432_v3, %v431_v1  ;;  %v454_v17 = vld [vmem:[#allocation10 + $0xb8] sm:$0xff]  ;;  %v455_v22 = vld [vmem:[#allocation10 + $0xc0] sm:$0xff] }
  0x64   :  { %699 = vmatprep.subr.bf16.mxu1 %v698_v8  ;;  %v712_v32 = vpack.c.bf16 %v332_v29, %v330_v28  ;;  %v336_v35 = vld [vmem:[#allocation8 + $0xb0] sm:$0xff]  ;;  %v456_v23 = vld [vmem:[#allocation10 + $0xc8] sm:$0xff]  ;;  %v458_v29 = vld [vmem:[#allocation10 + $0xd8] sm:$0xff] }
  0x65   :  { %693 = vmatpush3.bf16.msra.mxu0 %v692_v11  ;;  %v716_v36 = vpack.c.bf16 %v336_v35, %v334_v34  ;;  %v340_v55 = vld [vmem:[#allocation8 + $0xd0] sm:$0xff]  ;;  %v452_v11 = vld [vmem:[#allocation10 + $0xa8] sm:$0xff]  ;;  %v742_v25 = vpack.c.bf16 %v456_v23, %v455_v22  ;;  %v459_v34 = vld [vmem:[#allocation10 + $0xe0] sm:$0xff] }
  0x66   :  { %v720_v56 = vpack.c.bf16 %v340_v55, %v338_v54  ;;  %v344_v61 = vld [vmem:[#allocation8 + $0xf0] sm:$0xff]  ;;  %727 = vmatprep.subr.bf16.mxu0 %v726_v2  ;;  %v734_v13 = vpack.c.bf16 %v452_v11, %v451_v10  ;;  %v460_v35 = vld [vmem:[#allocation10 + $0xe8] sm:$0xff] }
  0x67   :  { %701 = vmatpush1.bf16.msra.mxu1 %v700_v14  ;;  %v724_v62 = vpack.c.bf16 %v344_v61, %v342_v60  ;;  %v449_v4 = vld [vmem:[#allocation10 + $0x90] sm:$0xff]  ;;  %v435_v14 = vld [vmem:[#allocation10 + $0x20] sm:$0xff] }
  0x68   :  { %703 = vmatprep.subr.bf16.mxu1 %v702_v15  ;;  %v730_v7 = vpack.c.bf16 %v450_v5, %v449_v4  ;;  %v433_v8 = vld [vmem:[#allocation10 + $0x10] sm:$0xff]  ;;  %v436_v15 = vld [vmem:[#allocation10 + $0x28] sm:$0xff] }
  0x69   :  { %v732_v12 = vpack.c.bf16 %v434_v9, %v433_v8  ;;  %v453_v16 = vld [vmem:[#allocation10 + $0xb0] sm:$0xff]  ;;  %v736_v18 = vpack.c.bf16 %v436_v15, %v435_v14 }
  0x6a   :  { %v738_v19 = vpack.c.bf16 %v454_v17, %v453_v16  ;;  %v457_v28 = vld [vmem:[#allocation10 + $0xd0] sm:$0xff] }
  0x6b   :  { %705 = vmatpush1.bf16.msra.mxu1 %v704_v20  ;;  %v437_v20 = vld [vmem:[#allocation10 + $0x30] sm:$0xff]  ;;  %v746_v31 = vpack.c.bf16 %v458_v29, %v457_v28 }
  0x6c   :  { %707 = vmatprep.subr.bf16.mxu1 %v706_v21  ;;  %v438_v21 = vld [vmem:[#allocation10 + $0x38] sm:$0xff]  ;;  %v591_v4 = vld [vmem:[%s1116_s7] ss:$0 sm:$0xff] }
  0x6d   :  { %v740_v24 = vpack.c.bf16 %v438_v21, %v437_v20 }
  0x6f   :  { %709 = vmatpush1.bf16.msra.mxu1 %v708_v26  ;;  %v439_v26 = vld [vmem:[#allocation10 + $0x40] sm:$0xff] }
  0x70   :  { %711 = vmatprep.subr.bf16.mxu1 %v710_v27  ;;  %v440_v27 = vld [vmem:[#allocation10 + $0x48] sm:$0xff] }
  0x71   :  { %v744_v30 = vpack.c.bf16 %v440_v27, %v439_v26 }
  0x73   :  { %713 = vmatpush1.bf16.msra.mxu1 %v712_v32  ;;  %v441_v32 = vld [vmem:[#allocation10 + $0x50] sm:$0xff] }
  0x74   :  { %715 = vmatprep.subr.bf16.mxu1 %v714_v33  ;;  %v442_v33 = vld [vmem:[#allocation10 + $0x58] sm:$0xff] }
  0x77   :  { %717 = vmatpush1.bf16.msra.mxu1 %v716_v36  ;;  %v748_v36 = vpack.c.bf16 %v442_v33, %v441_v32 }
  0x78   :  { %719 = vmatprep.subr.bf16.mxu1 %v718_v53  ;;  %v348_v53 = vlaneseq }
  0x7a   :  { %v349_v54 = vshrl.u32 %v348_v53, 7 }
  0x7b   :  { %721 = vmatpush1.bf16.msra.mxu1 %v720_v56  ;;  %v346_v56 = vld [vmem:[%s1114_s5] sm:$0x3]  ;;  %s849_s5 = scalar_lea.vmem %s548_s17, 128 }
  0x7c   :  { %723 = vmatprep.subr.bf16.mxu1 %v722_v59  ;;  %v350_v55 = vsub.s32 0, %v349_v54  ;;  %v354_v57 = vsub.s32 1, %v349_v54  ;;  %p850_p1 = scmp.ne.s32.totalorder %s548_s17, %s849_s5  ;;  %p855_p3 = scmp.lt.s32.totalorder %s849_s5, %s849_s5 }
  0x7e   :  { %v351_v58 = vrot.slane %v346_v56, %v350_v55  ;;  %v355_v59 = vrot.slane %v346_v56, %v354_v57  ;;  %p856_p4 = por %p855_p3, %p854_p2 }
  0x7f   :  { %725 = vmatpush1.bf16.msra.mxu1 %v724_v62 }
  0x80   :  { %p857_p5 = pnand %p856_p4, %p850_p1 }
  0xbf   :  { %v127_v37 = vpop.permute.xlu0 %126 }
  0xc0   :  { %129 = vst.msk [vmem:[#allocation2 + $0x8] sm:$0x1] %vm98_vm1, %v127_v37  ;;  %v96_v38 = vpop.permute.xlu1 %95  ;;  %v750_v37 = vpack.c.bf16 %v460_v35, %v459_v34 }
  0xc1   :  { %99 = vst.msk [vmem:[#allocation2] sm:$0x1] %vm98_vm1, %v96_v38 }
  0xc3   :  { %v183_v39 = vpop.permute.xlu0 %182 }
  0xc4   :  { %185 = vst.msk [vmem:[#allocation2 + $0x9] sm:$0x1] %vm98_vm1, %v183_v39  ;;  %v135_v40 = vpop.permute.xlu1 %134  ;;  %v590_v39 = vld [vmem:[%s1112_s3] ss:$0 sm:$0xff] }
  0xc5   :  { %137 = vst.msk [vmem:[#allocation2 + $0x8] sm:$0x1] %vm107_vm2, %v135_v40 }
  0xc7   :  { %v155_v41 = vpop.permute.xlu0 %154 }
  0xc8   :  { %157 = vst.msk [vmem:[#allocation2 + $0x1] sm:$0x1] %vm98_vm1, %v155_v41  ;;  %v191_v42 = vpop.permute.xlu1 %190 }
  0xc9   :  { %193 = vst.msk [vmem:[#allocation2 + $0x9] sm:$0x1] %vm107_vm2, %v191_v42 }
  0xcb   :  { %v105_v43 = vpop.permute.xlu0 %104 }
  0xcc   :  { %108 = vst.msk [vmem:[#allocation2] sm:$0x1] %vm107_vm2, %v105_v43  ;;  %v143_v44 = vpop.permute.xlu1 %142 }
  0xcd   :  { %145 = vst.msk [vmem:[#allocation2 + $0x8] sm:$0x1] %vm116_vm3, %v143_v44  ;;  %v443_v44 = vld [vmem:[#allocation10 + $0x60] sm:$0xff] }
  0xcf   :  { %v163_v45 = vpop.permute.xlu0 %162 }
  0xd0   :  { %165 = vst.msk [vmem:[#allocation2 + $0x1] sm:$0x1] %vm107_vm2, %v163_v45  ;;  %v199_v46 = vpop.permute.xlu1 %198  ;;  %v444_v45 = vld [vmem:[#allocation10 + $0x68] sm:$0xff] }
  0xd1   :  { %201 = vst.msk [vmem:[#allocation2 + $0x9] sm:$0x1] %vm116_vm3, %v199_v46  ;;  %v752_v46 = vpack.c.bf16 %v444_v45, %v443_v44 }
  0xd3   :  { %v114_v47 = vpop.permute.xlu0 %113 }
  0xd4   :  { %117 = vst.msk [vmem:[#allocation2] sm:$0x1] %vm116_vm3, %v114_v47  ;;  %v171_v48 = vpop.permute.xlu1 %170  ;;  %v461_v47 = vld [vmem:[#allocation10 + $0xf0] sm:$0xff] }
  0xd5   :  { %173 = vst.msk [vmem:[#allocation2 + $0x1] sm:$0x1] %vm116_vm3, %v171_v48  ;;  %v462_v48 = vld [vmem:[#allocation10 + $0xf8] sm:$0xff] }
  0xd8   :  { %v203_v49 = vld [vmem:[#allocation2 + $0x8] sm:$0xff] }
  0xd9   :  { %307 = vmatprep.mubr.f32.mxu0 %v203_v49  ;;  %v754_v49 = vpack.c.bf16 %v462_v48, %v461_v47 }
  0xdc   :  { %v202_v50 = vld [vmem:[#allocation2] sm:$0xff] }
  0xdd   :  { %308 = vmatmul.mubr.f32.vlgmr.msra.gmra.mrb[0].mxu0 %v202_v50  ;;  %v445_v50 = vld [vmem:[#allocation10 + $0x70] sm:$0xff] }
  0xde   :  { %729 = vmatpush3.bf16.msra.mxu0 %v728_v6  ;;  %v756_v52 = vpack.c.bf16 %v446_v51, %v445_v50 }
  0xdf   :  { %731 = vmatprep.subr.bf16.mxu0 %v730_v7 }
  0xe2   :  { %733 = vmatpush3.bf16.msra.mxu0 %v732_v12 }
  0xe3   :  { %735 = vmatprep.subr.bf16.mxu0 %v734_v13 }
  0xe6   :  { %737 = vmatpush3.bf16.msra.mxu0 %v736_v18 }
  0xe7   :  { %739 = vmatprep.subr.bf16.mxu0 %v738_v19 }
  0xea   :  { %741 = vmatpush3.bf16.msra.mxu0 %v740_v24 }
  0xeb   :  { %743 = vmatprep.subr.bf16.mxu0 %v742_v25 }
  0xee   :  { %745 = vmatpush3.bf16.msra.mxu0 %v744_v30 }
  0xef   :  { %747 = vmatprep.subr.bf16.mxu0 %v746_v31 }
  0xf2   :  { %749 = vmatpush3.bf16.msra.mxu0 %v748_v36 }
  0xf3   :  { %751 = vmatprep.subr.bf16.mxu0 %v750_v37 }
  0xf6   :  { %753 = vmatpush3.bf16.msra.mxu0 %v752_v46 }
  0xf7   :  { %755 = vmatprep.subr.bf16.mxu0 %v754_v49 }
  0xfa   :  { %757 = vmatpush3.bf16.msra.mxu0 %v756_v52 }
 0x1b0   :  { %v624_v38 = vpop.f32.mrb[0].mxu0 }
 0x1b1   :  { %v625_v40 = vpop.f32.mrb[1].mxu0 }
 0x1b2   :  { %v626_v41 = vadd.f32 %v625_v40, %v624_v38 }
 0x1b4   :  { %v310_v42 = vadd.f32 %v626_v41, %v590_v39 }
 0x1b6   :  { %v313_v43 = vmax.f32 %v310_v42, 0.0 }
 0x1b8   :  { %423 = vmatmul.mubr.f32.vlgmr.msra.gmra.mrb[0].mxu1 %v313_v43 }
 0x28b   :  { %v424_v60 = vpop.f32.mrb[0].mxu1 }
 0x28c   :  { %v425_v61 = vadd.f32 %v424_v60, %v351_v58  ;;  %v426_v62 = vpop.f32.mrb[1].mxu1 }
 0x28d   :  { %v427_v63 = vadd.f32 %v426_v62, %v355_v59 }
 0x28e   :  { %v429_v1 = vmax.f32 %v425_v61, 0.0 }
 0x28f   :  { %v430_v0 = vmax.f32 %v427_v63, 0.0 }
 0x291   :  { %534 = vmatprep.mubr.f32.mxu0 %v430_v0 }
 0x292   :  { %535 = vmatmul.mubr.f32.vlgmr.msra.gmra.mrb[2].mxu0 %v429_v1 }
 0x365   :  { %v659_v2 = vpop.f32.mrb[2].mxu0 }
 0x366   :  { %v660_v3 = vpop.f32.mrb[3].mxu0 }
 0x367   :  { %v661_v5 = vadd.f32 %v660_v3, %v659_v2 }
 0x369   :  { %v537_v6 = vadd.f32 %v661_v5, %v591_v4 }
 0x36b   :  { %540 = vst [vmem:[#allocation11] sm:$0xff] %v537_v6 }
 0x36c   :  { %860 = shalt.err (!%p857_p5)
}
 0x36d   :  { %s861_s22 = scalar_lea.hbm %s1117_s8, 128 }
 0x36e   :  { %p862_p6 = scmp.ne.s32.totalorder %s1117_s8, %s861_s22  ;;  %p865_p7 = scmp.lt.u32.totalorder %s861_s22, %s1117_s8 }
 0x370   :  { %p867_p8 = pnand %p865_p7, %p862_p6 }
 0x372   :  { %870 = shalt.err (!%p867_p8)
}
 0x373   :  { %550 = dma.vmem_to_hbm [thread:$0]  %s548_s17, 128, %s1117_s8, [#allocation5]  }
 0x374   :  { %877 = dma.done.wait [#allocation5], 128  }
 0x375   :  { %878 = vsyncadd [#allocation5], 4294967168 }
 0x376   :  { %554 = vsyncpa [#allocation4], 1 }
 0x377   :  { %555 = vsyncpa [#allocation9], 1 }
 0x378   :  { %556 = vsyncpa [#allocation5], 1 }
 0x379   :  { %557 = vsyncpa [#allocation6], 1 }

</bundles_post_ra>
